<compile_context>
chip_gen: v5e
topology: v5e:2x2
jax: 0.10.0
libtpu: 0.0.40
codegen_flags: <defaults>
</compile_context>

<pallas_src>
import jax
import jax.numpy as jnp
from jax import lax
from jax.experimental import pallas as pl
from jax.experimental.pallas import tpu as pltpu


# --------------------------------------------------------------------------
# Kernel bodies
# --------------------------------------------------------------------------
def _dot_nt(x, w_ref):
    """x: (TM, TK); w_ref block: (TN, TK) in native nn.Linear layout.
    Contract the K axis of both -> (TM, TN). Operands cast to the weight dtype
    (bf16 fast path); always accumulate in f32 on the MXU."""
    return lax.dot_general(
        x.astype(w_ref.dtype), w_ref[...],
        dimension_numbers=(((1,), (1,)), ((), ())),
        preferred_element_type=jnp.float32)


def _masked_x(x_ref, m_ref):
    # masked_fill: zero positions where the mask is nonzero (True).
    return jnp.where(m_ref[...] != 0, 0.0, x_ref[...])


# ---- single K step: no accumulator scratch, no init/finalize ----
def _k1_unmasked(x_ref, w_ref, b_ref, o_ref):
    y = _dot_nt(x_ref[...], w_ref) + b_ref[...].astype(jnp.float32)
    o_ref[...] = y.astype(o_ref.dtype)


def _k1_masked(x_ref, m_ref, w_ref, b_ref, o_ref):
    y = _dot_nt(_masked_x(x_ref, m_ref), w_ref) + b_ref[...].astype(jnp.float32)
    o_ref[...] = y.astype(o_ref.dtype)


# ---- multiple K steps: f32 VMEM accumulator with pl.when init/finalize ----
def _kacc_body(x, w_ref, b_ref, o_ref, acc_ref):
    k = pl.program_id(2)

    @pl.when(k == 0)
    def _():
        acc_ref[...] = jnp.zeros_like(acc_ref)

    acc_ref[...] += _dot_nt(x, w_ref)

    @pl.when(k == pl.num_programs(2) - 1)
    def _():
        o_ref[...] = (acc_ref[...] + b_ref[...].astype(jnp.float32)).astype(o_ref.dtype)


def _kacc_unmasked(x_ref, w_ref, b_ref, o_ref, acc_ref):
    _kacc_body(x_ref[...], w_ref, b_ref, o_ref, acc_ref)


def _kacc_masked(x_ref, m_ref, w_ref, b_ref, o_ref, acc_ref):
    _kacc_body(_masked_x(x_ref, m_ref), w_ref, b_ref, o_ref, acc_ref)


# --------------------------------------------------------------------------
# Tile selection
# --------------------------------------------------------------------------
def _k_plan(d_in):
    """Return (tk, padded_d_in)."""
    if d_in <= 2048:
        return d_in, d_in                      # single K step
    for tk in (512, 256, 128):
        if d_in % tk == 0:
            return tk, d_in
    # Odd large D_in: zero-pad K to a multiple of 512 (exact result; padded
    # x / W columns are zero) so the per-step VMEM working set stays bounded.
    return 512, ((d_in + 511) // 512) * 512


def _col_tile(d_out):
    if d_out <= 512:
        return d_out                           # full dim (always legal)
    for tn in (512, 384, 256):                 # lane-dense multiples of 128
        if d_out % tn == 0:
            return tn
    return 512                                 # partial last tile; store-masked


def _row_tile(n, tk, grid_j):
    cap = 512 if tk >= 2048 else 1024          # keep VMEM working set modest
    tm = n if n <= cap else cap
    # v7x has 2 TensorCores: if the (rows, cols) grid would be 1x1, split the
    # rows so both cores get a block. Multiple of 32 keeps int8 mask tiling ok.
    if tm == n and grid_j == 1 and n >= 64:
        half = (((n + 1) // 2) + 31) // 32 * 32
        if half < n:
            tm = half
    return tm


# --------------------------------------------------------------------------
# Wrappers
# --------------------------------------------------------------------------
def prepare_linear_params(weight, bias, *, use_bf16_matmul=True):
    """Optional one-time parameter prep: cast W to bf16 at load time so the
    per-call cast (one HBM pass over W) disappears. Layout stays (D_out, D_in)."""
    w = weight.astype(jnp.bfloat16) if use_bf16_matmul else weight
    return w, bias


def elementwise_mlp(x, weight, bias, x_mask=None, *, use_bf16_matmul=True):
    """Pallas implementation of ElementwiseMLP.forward.

    x:      (B, T, dim_in)
    weight: (dim_out, dim_in) -- native PyTorch nn.Linear layout (no transpose
            done here; pass a bf16 weight from prepare_linear_params to skip
            the per-call cast as well).
    bias:   (dim_out,)
    x_mask: optional (B, T) or (B, T, 1) bool; True = position to zero out.
    use_bf16_matmul: feed the MXU bf16 operands (f32 accumulate). Default True;
            set False for bit-closer f32 numerics.
    """
    B, T, D_in = x.shape
    D_out, D_in_w = weight.shape
    assert D_in_w == D_in, "weight must be (dim_out, dim_in)"
    N = B * T

    xf = x.reshape(N, D_in)
    w = weight
    if use_bf16_matmul and w.dtype != jnp.bfloat16:
        # Ideally done once at parameter-load time (prepare_linear_params);
        # doing it here costs one extra HBM pass over W per call.
        w = w.astype(jnp.bfloat16)

    tk, D_in_p = _k_plan(D_in)
    if D_in_p != D_in:
        pad = D_in_p - D_in
        xf = jnp.pad(xf, ((0, 0), (0, pad)))
        w = jnp.pad(w, ((0, 0), (0, pad)))

    tn = _col_tile(D_out)
    grid_j = pl.cdiv(D_out, tn)
    tm = _row_tile(N, tk, grid_j)
    grid_i = pl.cdiv(N, tm)
    grid_k = D_in_p // tk
    multi_k = grid_k > 1

    bb = bias.reshape(1, D_out)
    has_mask = x_mask is not None

    x_isz = jnp.dtype(xf.dtype).itemsize
    w_isz = jnp.dtype(w.dtype).itemsize
    o_isz = jnp.dtype(x.dtype).itemsize

    # Explicit double-buffered VMEM working set -> scoped limit with headroom.
    ws = (2 * tm * tk * x_isz + 2 * tn * tk * w_isz
          + 2 * tm * tn * o_isz + 2 * tn * 4)
    if multi_k:
        ws += tm * tn * 4                       # f32 accumulator scratch
    if has_mask:
        ws += 2 * tm                            # int8 mask stream
    vmem_limit = int(min(max(ws * 3 // 2 + (4 << 20), 32 << 20), 60 << 20))

    if multi_k:
        x_spec = pl.BlockSpec((tm, tk), lambda i, j, k: (i, k))
        m_spec = pl.BlockSpec((tm, 1), lambda i, j, k: (i, 0))
        w_spec = pl.BlockSpec((tn, tk), lambda i, j, k: (j, k))
        b_spec = pl.BlockSpec((1, tn), lambda i, j, k: (0, j))
        o_spec = pl.BlockSpec((tm, tn), lambda i, j, k: (i, j))
        grid = (grid_i, grid_j, grid_k)
        dims = ("parallel", "parallel", "arbitrary")
        scratch = [pltpu.VMEM((tm, tn), jnp.float32)]
        kernel = _kacc_masked if has_mask else _kacc_unmasked
    else:
        x_spec = pl.BlockSpec((tm, tk), lambda i, j: (i, 0))
        m_spec = pl.BlockSpec((tm, 1), lambda i, j: (i, 0))
        w_spec = pl.BlockSpec((tn, tk), lambda i, j: (j, 0))
        b_spec = pl.BlockSpec((1, tn), lambda i, j: (0, j))
        o_spec = pl.BlockSpec((tm, tn), lambda i, j: (i, j))
        grid = (grid_i, grid_j)
        dims = ("parallel", "parallel")
        scratch = []
        kernel = _k1_masked if has_mask else _k1_unmasked

    if has_mask:
        mf = x_mask.reshape(N, 1).astype(jnp.int8)   # slim mask stream
        in_specs = [x_spec, m_spec, w_spec, b_spec]
        args = (xf, mf, w, bb)
    else:
        in_specs = [x_spec, w_spec, b_spec]
        args = (xf, w, bb)

    bytes_accessed = (N * D_in * x_isz + D_out * D_in * w_isz
                      + D_out * jnp.dtype(bias.dtype).itemsize
                      + N * D_out * o_isz + (N if has_mask else 0))

    out = pl.pallas_call(
        kernel,
        out_shape=jax.ShapeDtypeStruct((N, D_out), x.dtype),
        grid_spec=pltpu.PrefetchScalarGridSpec(
            num_scalar_prefetch=0,
            grid=grid,
            in_specs=in_specs,
            out_specs=o_spec,
            scratch_shapes=scratch,
        ),
        compiler_params=pltpu.CompilerParams(
            dimension_semantics=dims,
            vmem_limit_bytes=vmem_limit,
        ),
        cost_estimate=pl.CostEstimate(
            flops=2 * N * D_in * D_out,
            transcendentals=0,
            bytes_accessed=bytes_accessed,
        ),
    )(*args)
    return out.reshape(B, T, D_out)


# --------------------------------------------------------------------------
# Self-test
# --------------------------------------------------------------------------
if __name__ == "__main__":
    # Small deterministic setup consistent with the module:
    # batch=2, seq=8, dim_in=32, dim_out=32.
    B, T, D_in, D_out = 2, 8, 32, 32
    key = jax.random.PRNGKey(0)
    kx, kw, kb, km = jax.random.split(key, 4)

    x = jax.random.normal(kx, (B, T, D_in), dtype=jnp.float32)
    bound = 1.0 / (D_in ** 0.5)              # nn.Linear-style init bounds
    weight = jax.random.uniform(kw, (D_out, D_in), jnp.float32, -bound, bound)
    bias = jax.random.uniform(kb, (D_out,), jnp.float32, -bound, bound)
    x_mask = jax.random.bernoulli(km, 0.3, (B, T))   # True = masked (zeroed)

    x_filled = jnp.where(x_mask[..., None], 0.0, x)
    y_ref = x_filled @ weight.T + bias

    # Masked path: bf16-MXU default and exact f32 path.
    y_bf16 = jax.block_until_ready(elementwise_mlp(x, weight, bias, x_mask))
    assert y_bf16.shape == (B, T, D_out)
    assert jnp.allclose(y_bf16, y_ref, atol=5e-2, rtol=5e-2)

    y_f32 = jax.block_until_ready(
        elementwise_mlp(x, weight, bias, x_mask, use_bf16_matmul=False))
    assert jnp.allclose(y_f32, y_ref, atol=1e-5, rtol=1e-5)

    # Unmasked (specialized, no mask DMA) path.
    y_nm = jax.block_until_ready(
        elementwise_mlp(x, weight, bias, None, use_bf16_matmul=False))
    assert jnp.allclose(y_nm, x @ weight.T + bias, atol=1e-5, rtol=1e-5)

    # Pre-cast weights once (recommended production path).
    w_bf16, b_same = prepare_linear_params(weight, bias)
    y_pc = jax.block_until_ready(elementwise_mlp(x, w_bf16, b_same, x_mask))
    assert jnp.allclose(y_pc, y_ref, atol=5e-2, rtol=5e-2)

    # Medium shape exercising row/col/K tiling, the accumulator pattern and the
    # 2-TensorCore row split (N=640 -> 2 row tiles, D_out=384 single col tile,
    # D_in=4096 -> 8 K steps).
    B2, T2, D_in2, D_out2 = 4, 160, 4096, 384
    kx2, kw2, kb2, km2 = jax.random.split(jax.random.PRNGKey(1), 4)
    x2 = jax.random.normal(kx2, (B2, T2, D_in2), dtype=jnp.float32)
    w2 = jax.random.normal(kw2, (D_out2, D_in2), jnp.float32) * (1.0 / D_in2 ** 0.5)
    b2 = jax.random.normal(kb2, (D_out2,), jnp.float32)
    m2 = jax.random.bernoulli(km2, 0.5, (B2, T2))
    x2_filled = jnp.where(m2[..., None], 0.0, x2).reshape(-1, D_in2)
    y2_ref = (jnp.matmul(x2_filled, w2.T, precision=lax.Precision.HIGHEST)
              .reshape(B2, T2, D_out2) + b2)

    y2_f32 = jax.block_until_ready(
        elementwise_mlp(x2, w2, b2, m2, use_bf16_matmul=False))
    assert jnp.allclose(y2_f32, y2_ref, atol=2e-3, rtol=2e-3)

    y2_bf16 = jax.block_until_ready(elementwise_mlp(x2, w2, b2, m2))
    assert jnp.allclose(y2_bf16, y2_ref, atol=5e-2, rtol=5e-2)

    # Odd large D_in: exercises the zero-padded K path (2500 -> 2560, TK=512).
    B3, T3, D_in3, D_out3 = 2, 40, 2500, 256
    kx3, kw3, kb3, km3 = jax.random.split(jax.random.PRNGKey(2), 4)
    x3 = jax.random.normal(kx3, (B3, T3, D_in3), dtype=jnp.float32)
    w3 = jax.random.normal(kw3, (D_out3, D_in3), jnp.float32) * (1.0 / D_in3 ** 0.5)
    b3 = jax.random.normal(kb3, (D_out3,), jnp.float32)
    m3 = jax.random.bernoulli(km3, 0.4, (B3, T3))
    x3_filled = jnp.where(m3[..., None], 0.0, x3).reshape(-1, D_in3)
    y3_ref = (jnp.matmul(x3_filled, w3.T, precision=lax.Precision.HIGHEST)
              .reshape(B3, T3, D_out3) + b3)
    y3_f32 = jax.block_until_ready(
        elementwise_mlp(x3, w3, b3, m3, use_bf16_matmul=False))
    assert jnp.allclose(y3_f32, y3_ref, atol=2e-3, rtol=2e-3)

    print("KERNEL_OK")
</pallas_src>

<mosaic_0001>
module attributes {stable_mosaic.version = 11 : i64} {
  func.func @_k1_masked(%arg0: i32, %arg1: i32, %arg2: memref<16x32xf32, #tpu.memory_space<vmem>>, %arg3: memref<16x1xi8, #tpu.memory_space<vmem>>, %arg4: memref<32x32xbf16, #tpu.memory_space<vmem>>, %arg5: memref<1x32xf32, #tpu.memory_space<vmem>>, %arg6: memref<16x32xf32, #tpu.memory_space<vmem>>) attributes {dimension_semantics = [#tpu.dimension_semantics<parallel>, #tpu.dimension_semantics<parallel>], iteration_bounds = array<i64: 1, 1>, scalar_prefetch = 0 : i64, scratch_operands = 0 : i64, tpu.core_type = #tpu.core_type<tc>, window_params = [{transform_indices = @transform_0, window_bounds = array<i64: 16, 32>}, {transform_indices = @transform_1, window_bounds = array<i64: 16, 1>}, {transform_indices = @transform_2, window_bounds = array<i64: 32, 32>}, {transform_indices = @transform_3, window_bounds = array<i64: 1, 32>}, {transform_indices = @transform_4, window_bounds = array<i64: 16, 32>}]} {
    %c0 = arith.constant 0 : index
    %c0_0 = arith.constant 0 : index
    %0 = vector.load %arg3[%c0, %c0_0] : memref<16x1xi8, #tpu.memory_space<vmem>>, vector<16x1xi8>
    %c0_i8 = arith.constant 0 : i8
    %1 = vector.broadcast %c0_i8 : i8 to vector<16x1xi8>
    %2 = arith.cmpi ne, %0, %1 : vector<16x1xi8>
    %c0_1 = arith.constant 0 : index
    %c0_2 = arith.constant 0 : index
    %3 = vector.load %arg2[%c0_1, %c0_2] : memref<16x32xf32, #tpu.memory_space<vmem>>, vector<16x32xf32>
    %cst = arith.constant 0.000000e+00 : f32
    %4 = vector.shape_cast %2 : vector<16x1xi1> to vector<16x1xi1>
    %5 = vector.broadcast %4 : vector<16x1xi1> to vector<16x32xi1>
    %6 = vector.broadcast %cst : f32 to vector<16x32xf32>
    %7 = arith.select %5, %6, %3 : vector<16x32xi1>, vector<16x32xf32>
    %8 = arith.truncf %7 : vector<16x32xf32> to vector<16x32xbf16>
    %c0_3 = arith.constant 0 : index
    %c0_4 = arith.constant 0 : index
    %9 = vector.load %arg4[%c0_3, %c0_4] : memref<32x32xbf16, #tpu.memory_space<vmem>>, vector<32x32xbf16>
    %cst_5 = arith.constant dense<0.000000e+00> : vector<16x32xf32>
    %10 = tpu.matmul %8, %9, %cst_5 {dimension_numbers = #tpu.dot_dimension_numbers<[1], [1], [0], [0], [0, 0, 1, 0], [], []>} : vector<16x32xbf16>, vector<32x32xbf16>, vector<16x32xf32> -> vector<16x32xf32>
    %c0_6 = arith.constant 0 : index
    %c0_7 = arith.constant 0 : index
    %11 = vector.load %arg5[%c0_6, %c0_7] : memref<1x32xf32, #tpu.memory_space<vmem>>, vector<1x32xf32>
    %12 = vector.broadcast %11 : vector<1x32xf32> to vector<16x32xf32>
    %13 = arith.addf %10, %12 : vector<16x32xf32>
    %c0_8 = arith.constant 0 : index
    %c0_9 = arith.constant 0 : index
    %14 = vector.load %arg6[%c0_8, %c0_9] : memref<16x32xf32, #tpu.memory_space<vmem>>, vector<16x32xf32>
    tpu.vector_store %arg6[%c0_8, %c0_9], %13 {strides = array<i32>} : memref<16x32xf32, #tpu.memory_space<vmem>>, vector<16x32xf32>,
    return
  }
  func.func @transform_0(%arg0: i32, %arg1: i32) -> (i32, i32) {
    %c0_i32 = arith.constant 0 : i32
    %c0_i32_0 = arith.constant 0 : i32
    return %arg0, %c0_i32 : i32, i32
  }
  func.func @transform_1(%arg0: i32, %arg1: i32) -> (i32, i32) {
    %c0_i32 = arith.constant 0 : i32
    %c0_i32_0 = arith.constant 0 : i32
    return %arg0, %c0_i32 : i32, i32
  }
  func.func @transform_2(%arg0: i32, %arg1: i32) -> (i32, i32) {
    %c0_i32 = arith.constant 0 : i32
    %c0_i32_0 = arith.constant 0 : i32
    return %arg1, %c0_i32 : i32, i32
  }
  func.func @transform_3(%arg0: i32, %arg1: i32) -> (i32, i32) {
    %c0_i32 = arith.constant 0 : i32
    %c0_i32_0 = arith.constant 0 : i32
    return %c0_i32, %arg1 : i32, i32
  }
  func.func @transform_4(%arg0: i32, %arg1: i32) -> (i32, i32) {
    %c0_i32 = arith.constant 0 : i32
    return %arg0, %arg1 : i32, i32
  }
}

</mosaic_0001>

<bundles_post_ra>
// kernel: tpu_custom_call.1
= control target key start
LH: loop header
LB: loop body
LE: loop exit
PB: predicated region body
PF: predicated region fallthrough
CT: control target
= control target key end

     0   :  { %9 = vsyncpa [#allocation3], 0  ;;  %s303_s0 = inlined_call_operand.hbm [shape: f32[16,32], index: 0, kind: input, shape index: {}]   ;;  %s304_s1 = inlined_call_operand.vmem [shape: s8[16,1], index: 1, kind: input, shape index: {}]   ;;  %s305_s2 = inlined_call_operand.hbm [shape: bf16[32,32], index: 2, kind: input, shape index: {}]   ;;  %s306_s3 = inlined_call_operand.vmem [shape: f32[1,32], index: 3, kind: input, shape index: {}]   ;;  %s307_s4 = inlined_call_operand.hbm [shape: f32[16,32], index: 4, kind: output, shape index: {}]  }
   0x1   :  { %10 = vsyncpa [#allocation6], 0 }
   0x2   :  { %11 = vsyncpa [#allocation4], 0  ;;  %s16_s17 = sshll.u32 %s303_s0, 4  ;;  %s241_s18 = smov [#allocation2]   ;;  %s17_s17 = int_to_ptr.hbm [resolvable:$true] %s16_s17 }
   0x3   :  { %s18_s19 = sshll.u32 %s241_s18, 4  ;;  %s31_s22 = sshll.u32 %s305_s2, 4  ;;  %s19_s19 = int_to_ptr.vmem [resolvable:$true] %s18_s19  ;;  %s32_s22 = int_to_ptr.hbm [resolvable:$true] %s31_s22 }
   0x4   :  { %s242_s23 = smov 128   ;;  %s243_s24 = smov 8  }
   0x5   :  { %24 = dma.hbm_to_vmem [thread:$0]  %s17_s17, 256, %s19_s19, [#allocation3], %s242_s23, %s242_s23, %s243_s24  }
   0x6   :  { %s244_s25 = smov [#allocation5]   ;;  %s245_s27 = smov 64  }
   0x7   :  { %s33_s26 = sshll.u32 %s244_s25, 4  ;;  %s246_s0 = smov 4   ;;  %s34_s26 = int_to_ptr.vmem [resolvable:$true] %s33_s26 }
   0x8   :  { %39 = dma.hbm_to_vmem [thread:$0]  %s32_s22, 256, %s34_s26, [#allocation6], %s245_s27, %s245_s27, %s246_s0  }
   0x9   :  { %235 = dma.done.wait [#allocation3], 256  }
   0xa   :  { %236 = vsyncadd [#allocation3], 4294967040 }
   0xb   :  { %237 = dma.done.wait [#allocation6], 256  }
   0xc   :  { %238 = vsyncadd [#allocation6], 4294967040  ;;  %v247_v0 = vmov 0   ;;  %vm96_vm0 = vcmask 261120   ;;  %v53_v1 = vld [vmem:[%s304_s1] sm:$0x3] }
   0xd   :  { %161 = vset.pattern.permute.xlu0 %v247_v0  ;;  %v54_v2 = vld [vmem:[%s304_s1 + $0x2] sm:$0x3]  ;;  %v152_v3 = vld [vmem:[#allocation5 + $0x8] sm:$0xff]  ;;  %vm55_vm1 = vnez %v53_v1  ;;  %v151_v11 = vld [vmem:[#allocation5] sm:$0xff]  ;;  %s248_s6 = smov [#allocation7]   ;;  %s128_s10 = sshll.u32 %s307_s4, 4  ;;  %s129_s10 = int_to_ptr.hbm [resolvable:$true] %s128_s10 }
   0xe   :  { %vm56_vm2 = vnez %v54_v2  ;;  %v59_v4 = vsel %vm55_vm1, 16843009, %v247_v0  ;;  %v104_v6 = vsel %vm96_vm0, %v152_v3, 0  ;;  %v101_v12 = vsel %vm96_vm0, %v151_v11, 0  ;;  %v57_v14 = vld [vmem:[#allocation2] sm:$0xff]  ;;  %v58_v15 = vld [vmem:[#allocation2 + $0x8] sm:$0xff] }
   0xf   :  { %v60_v5 = vsel %vm56_vm2, 16843009, %v247_v0  ;;  %v61_v7 = vunpack.c.0.s8 %v59_v4  ;;  %112 = vmatpush.bf16.xpose.msra.mxu0 %v104_v6  ;;  %v162_v20 = vld [vmem:[%s306_s3] ss:$0 sm:$0xff]  ;;  %s126_s7 = sshll.u32 %s248_s6, 4  ;;  %s127_s7 = int_to_ptr.vmem [resolvable:$true] %s126_s7 }
  0x10   :  { %v62_v8 = vunpack.c.0.s8 %v60_v5 }
  0x11   :  { %vm63_vm3 = vcmp.ne.s32.totalorder %v61_v7, 0 }
  0x12   :  { %v65_v9 = vsel %vm63_vm3, 1, %v247_v0  ;;  %vm64_vm4 = vcmp.ne.s32.totalorder %v62_v8, 0 }
  0x13   :  { %68 = vperm.xlu0 %161, %v65_v9   ;;  %v66_v10 = vsel %vm64_vm4, 1, %v247_v0 }
  0x17   :  { %113 = vmatpush.bf16.xpose.msra.mxu0 %v101_v12 }
  0x1b   :  { %71 = vperm.xlu0 %161, %v66_v10  }
  0x85   :  { %v69_v13 = vpop.permute.xlu0 %68 }
  0x86   :  { %vm73_vm5 = vcmp.eq.s32.totalorder %v69_v13, 1 }
  0x87   :  { %v75_v17 = vsel %vm73_vm5, 0.0, %v57_v14 }
  0x8d   :  { %v72_v16 = vpop.permute.xlu0 %71 }
  0x8e   :  { %vm74_vm6 = vcmp.eq.s32.totalorder %v72_v16, 1 }
  0x8f   :  { %v76_v18 = vsel %vm74_vm6, 0.0, %v58_v15 }
  0x90   :  { %v77_v19 = vpack.c.bf16 %v76_v18, %v75_v17 }
  0x92   :  { %150 = vmatmul.msk.bf16.vlgmr.msra.gmra.mxu0 %vm96_vm0, %v77_v19 }
 0x10f   :  { %v115_v21 = vpop.f32.mrf.mxu0 }
 0x110   :  { %v116_v22 = vadd.f32 %v162_v20, %v115_v21 }
 0x112   :  { %120 = vst.msk [vmem:[#allocation7] sm:$0xff] %vm96_vm0, %v116_v22 }
 0x117   :  { %v117_v23 = vpop.f32.mrf.mxu0 }
 0x118   :  { %v118_v24 = vadd.f32 %v162_v20, %v117_v23 }
 0x11a   :  { %121 = vst.msk [vmem:[#allocation7 + $0x8] sm:$0xff] %vm96_vm0, %v118_v24 }
 0x11b   :  { %134 = dma.vmem_to_hbm [thread:$0]  %s127_s7, 256, %s129_s10, [#allocation4], %s242_s23, %s242_s23, %s243_s24  }
 0x11c   :  { %239 = dma.done.wait [#allocation4], 256  }
 0x11d   :  { %240 = vsyncadd [#allocation4], 4294967040 }
 0x11e   :  { %139 = vsyncpa [#allocation3], 1 }
 0x11f   :  { %140 = vsyncpa [#allocation6], 1 }
 0x120   :  { %141 = vsyncpa [#allocation4], 1 }

</bundles_post_ra>
